<compile_context>
chip_gen: v5e
topology: v5e:2x2
jax: 0.10.0
libtpu: 0.0.40
codegen_flags: <defaults>
</compile_context>

<pallas_src>
import math

import jax
import jax.numpy as jnp
from jax.experimental import pallas as pl
from jax.experimental.pallas import tpu as pltpu


LANE = 128      # TPU lane width: hidden/output dims padded to this (lane-dense vregs)
SUBLANE = 8     # f32 sublane granularity: batch tiles rounded up to this


def _round_up(x, m):
    return ((x + m - 1) // m) * m


def actor_kernel(x_ref, w1_ref, b1_ref, w2_ref, b2_ref, w3_ref, b3_ref, o_ref):
    # x_ref: (TB, n_in) -- the singleton middle dim of `state` was squeezed by the BlockSpec.
    x = x_ref[...].astype(jnp.float32)  # matches torch .float(); no-op for f32 inputs
    h1 = jnp.dot(x, w1_ref[...], preferred_element_type=jnp.float32) + b1_ref[...]
    h1 = jnp.maximum(h1, 0.0)
    h2 = jnp.dot(h1, w2_ref[...], preferred_element_type=jnp.float32) + b2_ref[...]
    h2 = jnp.maximum(h2, 0.0)
    a = jnp.dot(h2, w3_ref[...], preferred_element_type=jnp.float32) + b3_ref[...]
    o_ref[...] = a.astype(o_ref.dtype)


def actor_forward(state, params, n_output, *, max_batch_tile=512):
    """state: (B, 1, n_input) float -> (B, n_output) float32."""
    w1, b1, w2, b2, w3, b3 = params
    B = state.shape[0]
    n_in = state.shape[-1]
    Fp = w1.shape[1]          # lane-padded hidden width
    n_out_pad = w3.shape[1]   # lane-padded output width

    # One grid axis over the batch; weights stay VMEM-resident across all grid steps
    # (their index_map is constant, so Pallas does not re-DMA them per tile).
    tb = min(max_batch_tile, _round_up(B, SUBLANE))
    b_pad = _round_up(B, tb)
    if b_pad != B:
        state = jnp.pad(state, ((0, b_pad - B), (0, 0), (0, 0)))

    out = pl.pallas_call(
        actor_kernel,
        out_shape=jax.ShapeDtypeStruct((b_pad, n_out_pad), jnp.float32),
        grid=(b_pad // tb,),
        in_specs=[
            # squeeze(dim=1) folded into the BlockSpec (None => squeezed dim).
            pl.BlockSpec((tb, None, n_in), lambda i: (i, 0, 0)),
            pl.BlockSpec((n_in, Fp), lambda i: (0, 0)),
            pl.BlockSpec((1, Fp), lambda i: (0, 0)),
            pl.BlockSpec((Fp, Fp), lambda i: (0, 0)),
            pl.BlockSpec((1, Fp), lambda i: (0, 0)),
            pl.BlockSpec((Fp, n_out_pad), lambda i: (0, 0)),
            pl.BlockSpec((1, n_out_pad), lambda i: (0, 0)),
        ],
        # Lane-dense (128-wide) output slab -> unmasked vector stores.
        out_specs=pl.BlockSpec((tb, n_out_pad), lambda i: (i, 0)),
        compiler_params=pltpu.CompilerParams(
            dimension_semantics=("parallel",),  # v7x: shard the batch grid across both TCs
        ),
    )(state, w1, b1, w2, b2, w3, b3)

    return out[:B, :n_output]


def xavier_uniform(key, fan_in, fan_out, gain):
    # Matches torch.nn.init.xavier_uniform_ (on a (fan_out, fan_in) weight);
    # produced directly in (fan_in, fan_out) layout for x @ W.
    bound = gain * math.sqrt(6.0 / (fan_in + fan_out))
    return jax.random.uniform(key, (fan_in, fan_out), jnp.float32, -bound, bound)


def linear_bias(key, fan_in, fan_out):
    # torch.nn.Linear default bias init: U(-1/sqrt(fan_in), 1/sqrt(fan_in))
    bound = 1.0 / math.sqrt(fan_in)
    return jax.random.uniform(key, (1, fan_out), jnp.float32, -bound, bound)


def _pad2d(a, rows, cols):
    out = jnp.zeros((rows, cols), jnp.float32)
    return out.at[: a.shape[0], : a.shape[1]].set(a)


def init_params(key, n_input, n_features, n_output):
    """Init matching the PyTorch module, then zero-pad hidden/output dims to 128 lanes.

    Padding is done once at init (free at runtime). Padded weight rows/columns and bias
    entries are zero, so ReLU(0)=0 propagates exactly and results are bit-identical in
    the real columns; the wrapper slices the real n_output columns back out.
    """
    gain_relu = math.sqrt(2.0)   # nn.init.calculate_gain('relu')
    gain_linear = 1.0            # nn.init.calculate_gain('linear')
    k = jax.random.split(key, 6)
    w1 = xavier_uniform(k[0], n_input, n_features, gain_relu)
    b1 = linear_bias(k[1], n_input, n_features)
    w2 = xavier_uniform(k[2], n_features, n_features, gain_relu)
    b2 = linear_bias(k[3], n_features, n_features)
    w3 = xavier_uniform(k[4], n_features, n_output, gain_linear)
    b3 = linear_bias(k[5], n_features, n_output)

    Fp = max(LANE, _round_up(n_features, LANE))
    n_out_pad = max(LANE, _round_up(n_output, LANE))

    w1p = _pad2d(w1, n_input, Fp)
    b1p = _pad2d(b1, 1, Fp)
    w2p = _pad2d(w2, Fp, Fp)
    b2p = _pad2d(b2, 1, Fp)
    w3p = _pad2d(w3, Fp, n_out_pad)
    b3p = _pad2d(b3, 1, n_out_pad)
    return (w1p, b1p, w2p, b2p, w3p, b3p)


if __name__ == "__main__":
    # Pendulum-like sizes: obs dim 3, action dim 1, hidden 32.
    n_input, n_features, n_output = 3, 32, 1

    key = jax.random.PRNGKey(0)
    pkey, skey1, skey2 = jax.random.split(key, 3)
    params = init_params(pkey, n_input, n_features, n_output)
    w1, b1, w2, b2, w3, b3 = params

    def ref_forward(state):
        x = jnp.squeeze(state, 1).astype(jnp.float32)
        h = jnp.maximum(x @ w1 + b1, 0.0)
        h = jnp.maximum(h @ w2 + b2, 0.0)
        return (h @ w3 + b3)[:, :n_output]

    # Primary case: batch large enough to amortize launch/DMA overhead.
    B = 128
    state = jax.random.normal(skey1, (B, 1, n_input), jnp.float32)
    out = actor_forward(state, params, n_output)
    jax.block_until_ready(out)
    assert out.shape == (B, n_output)
    assert jnp.allclose(out, ref_forward(state), atol=1e-5), "mismatch vs reference (B=128)"

    # Small / ragged batch exercises the pad-and-slice path.
    Bs = 5
    state_s = jax.random.normal(skey2, (Bs, 1, n_input), jnp.float32)
    out_s = actor_forward(state_s, params, n_output)
    jax.block_until_ready(out_s)
    assert out_s.shape == (Bs, n_output)
    assert jnp.allclose(out_s, ref_forward(state_s), atol=1e-5), "mismatch vs reference (B=5)"

    print("KERNEL_OK")
</pallas_src>

<mosaic_0001>
module attributes {stable_mosaic.version = 11 : i64} {
  func.func @actor_kernel(%arg0: i32, %arg1: memref<128x1x3xf32, #tpu.memory_space<vmem>>, %arg2: memref<3x128xf32, #tpu.memory_space<vmem>>, %arg3: memref<1x128xf32, #tpu.memory_space<vmem>>, %arg4: memref<128x128xf32, #tpu.memory_space<vmem>>, %arg5: memref<1x128xf32, #tpu.memory_space<vmem>>, %arg6: memref<128x128xf32, #tpu.memory_space<vmem>>, %arg7: memref<1x128xf32, #tpu.memory_space<vmem>>, %arg8: memref<128x128xf32, #tpu.memory_space<vmem>>) attributes {dimension_semantics = [#tpu.dimension_semantics<parallel>], iteration_bounds = array<i64: 1>, scalar_prefetch = 0 : i64, scratch_operands = 0 : i64, tpu.core_type = #tpu.core_type<tc>, window_params = [{transform_indices = @transform_0, window_bounds = array<i64: 128, 1, 3>}, {pipeline_mode = #tpu.pipeline_mode<synchronous>, transform_indices = @transform_1, window_bounds = array<i64: 3, 128>}, {pipeline_mode = #tpu.pipeline_mode<synchronous>, transform_indices = @transform_2, window_bounds = array<i64: 1, 128>}, {pipeline_mode = #tpu.pipeline_mode<synchronous>, transform_indices = @transform_3, window_bounds = array<i64: 128, 128>}, {pipeline_mode = #tpu.pipeline_mode<synchronous>, transform_indices = @transform_4, window_bounds = array<i64: 1, 128>}, {pipeline_mode = #tpu.pipeline_mode<synchronous>, transform_indices = @transform_5, window_bounds = array<i64: 128, 128>}, {pipeline_mode = #tpu.pipeline_mode<synchronous>, transform_indices = @transform_6, window_bounds = array<i64: 1, 128>}, {transform_indices = @transform_7, window_bounds = array<i64: 128, 128>}]} {
    %c0 = arith.constant 0 : index
    %c0_0 = arith.constant 0 : index
    %c0_1 = arith.constant 0 : index
    %0 = vector.load %arg1[%c0, %c0_0, %c0_1] : memref<128x1x3xf32, #tpu.memory_space<vmem>>, vector<128x1x3xf32>
    %1 = vector.shape_cast %0 : vector<128x1x3xf32> to vector<128x3xf32>
    %c0_2 = arith.constant 0 : index
    %c0_3 = arith.constant 0 : index
    %2 = vector.load %arg2[%c0_2, %c0_3] : memref<3x128xf32, #tpu.memory_space<vmem>>, vector<3x128xf32>
    %cst = arith.constant dense<0.000000e+00> : vector<128x128xf32>
    %3 = tpu.matmul %1, %2, %cst {dimension_numbers = #tpu.dot_dimension_numbers<[1], [0], [0], [1], [0, 0, 1, 1], [], []>} : vector<128x3xf32>, vector<3x128xf32>, vector<128x128xf32> -> vector<128x128xf32>
    %c0_4 = arith.constant 0 : index
    %c0_5 = arith.constant 0 : index
    %4 = vector.load %arg3[%c0_4, %c0_5] : memref<1x128xf32, #tpu.memory_space<vmem>>, vector<1x128xf32>
    %5 = vector.broadcast %4 : vector<1x128xf32> to vector<128x128xf32>
    %6 = arith.addf %3, %5 : vector<128x128xf32>
    %cst_6 = arith.constant 0.000000e+00 : f32
    %7 = vector.broadcast %cst_6 : f32 to vector<128x128xf32>
    %8 = arith.maximumf %6, %7 : vector<128x128xf32>
    %c0_7 = arith.constant 0 : index
    %c0_8 = arith.constant 0 : index
    %9 = vector.load %arg4[%c0_7, %c0_8] : memref<128x128xf32, #tpu.memory_space<vmem>>, vector<128x128xf32>
    %cst_9 = arith.constant dense<0.000000e+00> : vector<128x128xf32>
    %10 = tpu.matmul %8, %9, %cst_9 {dimension_numbers = #tpu.dot_dimension_numbers<[1], [0], [0], [1], [0, 0, 1, 1], [], []>} : vector<128x128xf32>, vector<128x128xf32>, vector<128x128xf32> -> vector<128x128xf32>
    %c0_10 = arith.constant 0 : index
    %c0_11 = arith.constant 0 : index
    %11 = vector.load %arg5[%c0_10, %c0_11] : memref<1x128xf32, #tpu.memory_space<vmem>>, vector<1x128xf32>
    %12 = vector.broadcast %11 : vector<1x128xf32> to vector<128x128xf32>
    %13 = arith.addf %10, %12 : vector<128x128xf32>
    %cst_12 = arith.constant 0.000000e+00 : f32
    %14 = vector.broadcast %cst_12 : f32 to vector<128x128xf32>
    %15 = arith.maximumf %13, %14 : vector<128x128xf32>
    %c0_13 = arith.constant 0 : index
    %c0_14 = arith.constant 0 : index
    %16 = vector.load %arg6[%c0_13, %c0_14] : memref<128x128xf32, #tpu.memory_space<vmem>>, vector<128x128xf32>
    %cst_15 = arith.constant dense<0.000000e+00> : vector<128x128xf32>
    %17 = tpu.matmul %15, %16, %cst_15 {dimension_numbers = #tpu.dot_dimension_numbers<[1], [0], [0], [1], [0, 0, 1, 1], [], []>} : vector<128x128xf32>, vector<128x128xf32>, vector<128x128xf32> -> vector<128x128xf32>
    %c0_16 = arith.constant 0 : index
    %c0_17 = arith.constant 0 : index
    %18 = vector.load %arg7[%c0_16, %c0_17] : memref<1x128xf32, #tpu.memory_space<vmem>>, vector<1x128xf32>
    %19 = vector.broadcast %18 : vector<1x128xf32> to vector<128x128xf32>
    %20 = arith.addf %17, %19 : vector<128x128xf32>
    %c0_18 = arith.constant 0 : index
    %c0_19 = arith.constant 0 : index
    %21 = vector.load %arg8[%c0_18, %c0_19] : memref<128x128xf32, #tpu.memory_space<vmem>>, vector<128x128xf32>
    tpu.vector_store %arg8[%c0_18, %c0_19], %20 {strides = array<i32>} : memref<128x128xf32, #tpu.memory_space<vmem>>, vector<128x128xf32>,
    return
  }
  func.func @transform_0(%arg0: i32) -> (i32, i32, i32) {
    %c0_i32 = arith.constant 0 : i32
    %c0_i32_0 = arith.constant 0 : i32
    %c0_i32_1 = arith.constant 0 : i32
    return %arg0, %c0_i32, %c0_i32_0 : i32, i32, i32
  }
  func.func @transform_1(%arg0: i32) -> (i32, i32) {
    %c0_i32 = arith.constant 0 : i32
    %c0_i32_0 = arith.constant 0 : i32
    %c0_i32_1 = arith.constant 0 : i32
    return %c0_i32, %c0_i32_0 : i32, i32
  }
  func.func @transform_2(%arg0: i32) -> (i32, i32) {
    %c0_i32 = arith.constant 0 : i32
    %c0_i32_0 = arith.constant 0 : i32
    %c0_i32_1 = arith.constant 0 : i32
    return %c0_i32, %c0_i32_0 : i32, i32
  }
  func.func @transform_3(%arg0: i32) -> (i32, i32) {
    %c0_i32 = arith.constant 0 : i32
    %c0_i32_0 = arith.constant 0 : i32
    %c0_i32_1 = arith.constant 0 : i32
    return %c0_i32, %c0_i32_0 : i32, i32
  }
  func.func @transform_4(%arg0: i32) -> (i32, i32) {
    %c0_i32 = arith.constant 0 : i32
    %c0_i32_0 = arith.constant 0 : i32
    %c0_i32_1 = arith.constant 0 : i32
    return %c0_i32, %c0_i32_0 : i32, i32
  }
  func.func @transform_5(%arg0: i32) -> (i32, i32) {
    %c0_i32 = arith.constant 0 : i32
    %c0_i32_0 = arith.constant 0 : i32
    %c0_i32_1 = arith.constant 0 : i32
    return %c0_i32, %c0_i32_0 : i32, i32
  }
  func.func @transform_6(%arg0: i32) -> (i32, i32) {
    %c0_i32 = arith.constant 0 : i32
    %c0_i32_0 = arith.constant 0 : i32
    %c0_i32_1 = arith.constant 0 : i32
    return %c0_i32, %c0_i32_0 : i32, i32
  }
  func.func @transform_7(%arg0: i32) -> (i32, i32) {
    %c0_i32 = arith.constant 0 : i32
    %c0_i32_0 = arith.constant 0 : i32
    return %arg0, %c0_i32 : i32, i32
  }
}

</mosaic_0001>

<bundles_post_ra>
// kernel: tpu_custom_call.1
= control target key start
LH: loop header
LB: loop body
LE: loop exit
PB: predicated region body
PF: predicated region fallthrough
CT: control target
= control target key end

     0   :  { %12 = vsyncpa [#allocation3], 0  ;;  %s1454_s0 = inlined_call_operand.vmem [shape: f32[128,1,3], index: 0, kind: input, shape index: {}]   ;;  %s1455_s1 = inlined_call_operand.vmem [shape: f32[3,128], index: 1, kind: input, shape index: {}]   ;;  %s1456_s2 = inlined_call_operand.vmem [shape: f32[1,128], index: 2, kind: input, shape index: {}]   ;;  %s1457_s3 = inlined_call_operand.vmem [shape: f32[128,128], index: 3, kind: input, shape index: {}]   ;;  %s1458_s4 = inlined_call_operand.vmem [shape: f32[1,128], index: 4, kind: input, shape index: {}]   ;;  %s1459_s5 = inlined_call_operand.hbm [shape: f32[128,128], index: 5, kind: input, shape index: {}]   ;;  %s1460_s6 = inlined_call_operand.vmem [shape: f32[1,128], index: 6, kind: input, shape index: {}]   ;;  %s1461_s7 = inlined_call_operand.hbm [shape: f32[128,128], index: 7, kind: output, shape index: {}]  }
   0x1   :  { %13 = vsyncpa [#allocation4], 0  ;;  %s28_s26 = sshll.u32 %s1459_s5, 4  ;;  %s902_s27 = smov [#allocation2]   ;;  %s29_s26 = int_to_ptr.hbm [resolvable:$true] %s28_s26 }
   0x2   :  { %s30_s28 = sshll.u32 %s902_s27, 4  ;;  %s903_s29 = smov 128   ;;  %s31_s28 = int_to_ptr.vmem [resolvable:$true] %s30_s28 }
   0x3   :  { %s904_s30 = smov 8  }
   0x4   :  { %36 = dma.hbm_to_vmem [thread:$0]  %s29_s26, 2048, %s31_s28, [#allocation3], %s903_s29, %s903_s29, %s904_s30  }
   0x5   :  { %898 = dma.done.wait [#allocation3], 2048  }
   0x6   :  { %899 = vsyncadd [#allocation3], 4294965248  ;;  %vm488_vm0 = vcmask 1042432   ;;  %v171_v0 = vld [vmem:[%s1455_s1] sm:$0x7]  ;;  %vm455_vm1 = vcmask 23552  }
   0x7   :  { %v43_v1 = vld [vmem:[%s1454_s0] sm:$0x1]  ;;  %794 = vmatpush.msk.msra.mxu0 %vm488_vm0, %v171_v0  ;;  %v44_v2 = vld [vmem:[%s1454_s0 + $0x1] sm:$0x1]  ;;  %v45_v3 = vld [vmem:[%s1454_s0 + $0x2] sm:$0x1] }
   0x8   :  { %v46_v4 = vld [vmem:[%s1454_s0 + $0x3] sm:$0x1]  ;;  %304 = vst [vmem:[#allocation1] ss:$9 sm:$0xff] %v43_v1  ;;  %v47_v5 = vld [vmem:[%s1454_s0 + $0x4] sm:$0x1] }
   0x9   :  { %306 = vst [vmem:[#allocation1 + $0x1] ss:$9 sm:$0xff] %v44_v2  ;;  %v48_v6 = vld [vmem:[%s1454_s0 + $0x5] sm:$0x1]  ;;  %v49_v7 = vld [vmem:[%s1454_s0 + $0x6] sm:$0x1] }
   0xa   :  { %308 = vst [vmem:[#allocation1 + $0x2] ss:$9 sm:$0xff] %v45_v3  ;;  %v50_v8 = vld [vmem:[%s1454_s0 + $0x7] sm:$0x1]  ;;  %v51_v9 = vld [vmem:[%s1454_s0 + $0x8] sm:$0x1] }
   0xb   :  { %310 = vst [vmem:[#allocation1 + $0x3] ss:$9 sm:$0xff] %v46_v4  ;;  %v52_v10 = vld [vmem:[%s1454_s0 + $0x9] sm:$0x1]  ;;  %v53_v12 = vld [vmem:[%s1454_s0 + $0xa] sm:$0x1] }
   0xc   :  { %312 = vst [vmem:[#allocation1 + $0x4] ss:$9 sm:$0xff] %v47_v5  ;;  %v54_v13 = vld [vmem:[%s1454_s0 + $0xb] sm:$0x1]  ;;  %v55_v14 = vld [vmem:[%s1454_s0 + $0xc] sm:$0x1] }
   0xd   :  { %314 = vst [vmem:[#allocation1 + $0x5] ss:$9 sm:$0xff] %v48_v6  ;;  %v56_v15 = vld [vmem:[%s1454_s0 + $0xd] sm:$0x1]  ;;  %v57_v16 = vld [vmem:[%s1454_s0 + $0xe] sm:$0x1] }
   0xe   :  { %316 = vst [vmem:[#allocation1 + $0x6] ss:$9 sm:$0xff] %v49_v7  ;;  %v58_v17 = vld [vmem:[%s1454_s0 + $0xf] sm:$0x1]  ;;  %v59_v18 = vld [vmem:[%s1454_s0 + $0x10] sm:$0x1] }
   0xf   :  { %318 = vst [vmem:[#allocation1 + $0x7] ss:$9 sm:$0xff] %v50_v8  ;;  %v60_v19 = vld [vmem:[%s1454_s0 + $0x11] sm:$0x1]  ;;  %v61_v21 = vld [vmem:[%s1454_s0 + $0x12] sm:$0x1] }
  0x10   :  { %v62_v22 = vld [vmem:[%s1454_s0 + $0x13] sm:$0x1]  ;;  %v63_v23 = vld [vmem:[%s1454_s0 + $0x14] sm:$0x1]  ;;  %v64_v24 = vld [vmem:[%s1454_s0 + $0x15] sm:$0x1] }
  0x11   :  { %v65_v25 = vld [vmem:[%s1454_s0 + $0x16] sm:$0x1]  ;;  %v66_v26 = vld [vmem:[%s1454_s0 + $0x17] sm:$0x1]  ;;  %v67_v27 = vld [vmem:[%s1454_s0 + $0x18] sm:$0x1] }
  0x12   :  { %v68_v28 = vld [vmem:[%s1454_s0 + $0x19] sm:$0x1]  ;;  %v69_v30 = vld [vmem:[%s1454_s0 + $0x1a] sm:$0x1]  ;;  %v70_v31 = vld [vmem:[%s1454_s0 + $0x1b] sm:$0x1] }
  0x13   :  { %v71_v32 = vld [vmem:[%s1454_s0 + $0x1c] sm:$0x1]  ;;  %v72_v33 = vld [vmem:[%s1454_s0 + $0x1d] sm:$0x1]  ;;  %v73_v34 = vld [vmem:[%s1454_s0 + $0x1e] sm:$0x1] }
  0x14   :  { %v74_v35 = vld [vmem:[%s1454_s0 + $0x1f] sm:$0x1]  ;;  %v75_v36 = vld [vmem:[%s1454_s0 + $0x20] sm:$0x1]  ;;  %v76_v37 = vld [vmem:[%s1454_s0 + $0x21] sm:$0x1] }
  0x15   :  { %v77_v39 = vld [vmem:[%s1454_s0 + $0x22] sm:$0x1]  ;;  %v78_v40 = vld [vmem:[%s1454_s0 + $0x23] sm:$0x1]  ;;  %v79_v41 = vld [vmem:[%s1454_s0 + $0x24] sm:$0x1] }
  0x16   :  { %v319_v11 = vld [vmem:[#allocation1] sm:$0xff]  ;;  %v83_v45 = vld [vmem:[%s1454_s0 + $0x28] sm:$0x1]  ;;  %v84_v46 = vld [vmem:[%s1454_s0 + $0x29] sm:$0x1]  ;;  %s781_s24 = sshll.u32 %s1461_s7, 4  ;;  %s782_s24 = int_to_ptr.hbm [resolvable:$true] %s781_s24 }
  0x17   :  { %795 = vmatmul.msk.f32.vlgmr.msra.gmra.mxu0 %vm455_vm1, %v319_v11  ;;  %320 = vst [vmem:[#allocation1] ss:$9 sm:$0xff] %v51_v9  ;;  %v80_v42 = vld [vmem:[%s1454_s0 + $0x25] sm:$0x1]  ;;  %v81_v43 = vld [vmem:[%s1454_s0 + $0x26] sm:$0x1] }
  0x18   :  { %321 = vst [vmem:[#allocation1 + $0x1] ss:$9 sm:$0xff] %v52_v10  ;;  %v82_v44 = vld [vmem:[%s1454_s0 + $0x27] sm:$0x1]  ;;  %v85_v48 = vld [vmem:[%s1454_s0 + $0x2a] sm:$0x1] }
  0x19   :  { %322 = vst [vmem:[#allocation1 + $0x2] ss:$9 sm:$0xff] %v53_v12  ;;  %v86_v49 = vld [vmem:[%s1454_s0 + $0x2b] sm:$0x1]  ;;  %v87_v50 = vld [vmem:[%s1454_s0 + $0x2c] sm:$0x1] }
  0x1a   :  { %323 = vst [vmem:[#allocation1 + $0x3] ss:$9 sm:$0xff] %v54_v13  ;;  %v88_v51 = vld [vmem:[%s1454_s0 + $0x2d] sm:$0x1]  ;;  %v89_v52 = vld [vmem:[%s1454_s0 + $0x2e] sm:$0x1] }
  0x1b   :  { %324 = vst [vmem:[#allocation1 + $0x4] ss:$9 sm:$0xff] %v55_v14  ;;  %v90_v53 = vld [vmem:[%s1454_s0 + $0x2f] sm:$0x1]  ;;  %v91_v54 = vld [vmem:[%s1454_s0 + $0x30] sm:$0x1] }
  0x1c   :  { %325 = vst [vmem:[#allocation1 + $0x5] ss:$9 sm:$0xff] %v56_v15  ;;  %v92_v55 = vld [vmem:[%s1454_s0 + $0x31] sm:$0x1]  ;;  %v93_v57 = vld [vmem:[%s1454_s0 + $0x32] sm:$0x1] }
  0x1d   :  { %326 = vst [vmem:[#allocation1 + $0x6] ss:$9 sm:$0xff] %v57_v16  ;;  %v94_v58 = vld [vmem:[%s1454_s0 + $0x33] sm:$0x1]  ;;  %v95_v59 = vld [vmem:[%s1454_s0 + $0x34] sm:$0x1] }
  0x1e   :  { %327 = vst [vmem:[#allocation1 + $0x7] ss:$9 sm:$0xff] %v58_v17  ;;  %v96_v60 = vld [vmem:[%s1454_s0 + $0x35] sm:$0x1]  ;;  %v97_v61 = vld [vmem:[%s1454_s0 + $0x36] sm:$0x1] }
  0x1f   :  { %v98_v62 = vld [vmem:[%s1454_s0 + $0x37] sm:$0x1]  ;;  %v99_v63 = vld [vmem:[%s1454_s0 + $0x38] sm:$0x1]  ;;  %v100_v0 = vld [vmem:[%s1454_s0 + $0x39] sm:$0x1] }
  0x20   :  { %v101_v2 = vld [vmem:[%s1454_s0 + $0x3a] sm:$0x1]  ;;  %v102_v3 = vld [vmem:[%s1454_s0 + $0x3b] sm:$0x1]  ;;  %v103_v4 = vld [vmem:[%s1454_s0 + $0x3c] sm:$0x1] }
  0x21   :  { %v104_v5 = vld [vmem:[%s1454_s0 + $0x3d] sm:$0x1]  ;;  %v105_v6 = vld [vmem:[%s1454_s0 + $0x3e] sm:$0x1]  ;;  %v106_v7 = vld [vmem:[%s1454_s0 + $0x3f] sm:$0x1] }
  0x22   :  { %v107_v8 = vld [vmem:[%s1454_s0 + $0x40] sm:$0x1]  ;;  %v108_v9 = vld [vmem:[%s1454_s0 + $0x41] sm:$0x1]  ;;  %v109_v11 = vld [vmem:[%s1454_s0 + $0x42] sm:$0x1] }
  0x23   :  { %v110_v12 = vld [vmem:[%s1454_s0 + $0x43] sm:$0x1]  ;;  %v111_v13 = vld [vmem:[%s1454_s0 + $0x44] sm:$0x1]  ;;  %v112_v14 = vld [vmem:[%s1454_s0 + $0x45] sm:$0x1] }
  0x24   :  { %v113_v15 = vld [vmem:[%s1454_s0 + $0x46] sm:$0x1]  ;;  %v114_v16 = vld [vmem:[%s1454_s0 + $0x47] sm:$0x1]  ;;  %v115_v17 = vld [vmem:[%s1454_s0 + $0x48] sm:$0x1] }
  0x25   :  { %v328_v20 = vld [vmem:[#allocation1] sm:$0xff] }
  0x26   :  { %796 = vmatmul.msk.f32.gmra.mxu0 %vm455_vm1, %v328_v20  ;;  %329 = vst [vmem:[#allocation1] ss:$9 sm:$0xff] %v59_v18  ;;  %v116_v18 = vld [vmem:[%s1454_s0 + $0x49] sm:$0x1]  ;;  %v117_v20 = vld [vmem:[%s1454_s0 + $0x4a] sm:$0x1] }
  0x27   :  { %330 = vst [vmem:[#allocation1 + $0x1] ss:$9 sm:$0xff] %v60_v19 }
  0x28   :  { %331 = vst [vmem:[#allocation1 + $0x2] ss:$9 sm:$0xff] %v61_v21  ;;  %v118_v21 = vld [vmem:[%s1454_s0 + $0x4b] sm:$0x1] }
  0x29   :  { %332 = vst [vmem:[#allocation1 + $0x3] ss:$9 sm:$0xff] %v62_v22  ;;  %v119_v22 = vld [vmem:[%s1454_s0 + $0x4c] sm:$0x1] }
  0x2a   :  { %333 = vst [vmem:[#allocation1 + $0x4] ss:$9 sm:$0xff] %v63_v23  ;;  %v120_v23 = vld [vmem:[%s1454_s0 + $0x4d] sm:$0x1] }
  0x2b   :  { %334 = vst [vmem:[#allocation1 + $0x5] ss:$9 sm:$0xff] %v64_v24  ;;  %v121_v24 = vld [vmem:[%s1454_s0 + $0x4e] sm:$0x1] }
  0x2c   :  { %335 = vst [vmem:[#allocation1 + $0x6] ss:$9 sm:$0xff] %v65_v25  ;;  %v122_v25 = vld [vmem:[%s1454_s0 + $0x4f] sm:$0x1] }
  0x2d   :  { %336 = vst [vmem:[#allocation1 + $0x7] ss:$9 sm:$0xff] %v66_v26  ;;  %v123_v26 = vld [vmem:[%s1454_s0 + $0x50] sm:$0x1] }
  0x34   :  { %v337_v29 = vld [vmem:[#allocation1] sm:$0xff] }
  0x35   :  { %797 = vmatmul.msk.f32.gmra.mxu0 %vm455_vm1, %v337_v29  ;;  %338 = vst [vmem:[#allocation1] ss:$9 sm:$0xff] %v67_v27  ;;  %v124_v27 = vld [vmem:[%s1454_s0 + $0x51] sm:$0x1]  ;;  %v125_v29 = vld [vmem:[%s1454_s0 + $0x52] sm:$0x1] }
  0x36   :  { %339 = vst [vmem:[#allocation1 + $0x1] ss:$9 sm:$0xff] %v68_v28 }
  0x37   :  { %340 = vst [vmem:[#allocation1 + $0x2] ss:$9 sm:$0xff] %v69_v30  ;;  %v126_v30 = vld [vmem:[%s1454_s0 + $0x53] sm:$0x1] }
  0x38   :  { %341 = vst [vmem:[#allocation1 + $0x3] ss:$9 sm:$0xff] %v70_v31  ;;  %v127_v31 = vld [vmem:[%s1454_s0 + $0x54] sm:$0x1] }
  0x39   :  { %342 = vst [vmem:[#allocation1 + $0x4] ss:$9 sm:$0xff] %v71_v32  ;;  %v128_v32 = vld [vmem:[%s1454_s0 + $0x55] sm:$0x1] }
  0x3a   :  { %343 = vst [vmem:[#allocation1 + $0x5] ss:$9 sm:$0xff] %v72_v33  ;;  %v129_v33 = vld [vmem:[%s1454_s0 + $0x56] sm:$0x1] }
  0x3b   :  { %344 = vst [vmem:[#allocation1 + $0x6] ss:$9 sm:$0xff] %v73_v34  ;;  %v130_v34 = vld [vmem:[%s1454_s0 + $0x57] sm:$0x1] }
  0x3c   :  { %345 = vst [vmem:[#allocation1 + $0x7] ss:$9 sm:$0xff] %v74_v35  ;;  %v131_v35 = vld [vmem:[%s1454_s0 + $0x58] sm:$0x1] }
  0x43   :  { %v346_v38 = vld [vmem:[#allocation1] sm:$0xff] }
  0x44   :  { %798 = vmatmul.msk.f32.gmra.mxu0 %vm455_vm1, %v346_v38  ;;  %347 = vst [vmem:[#allocation1] ss:$9 sm:$0xff] %v75_v36  ;;  %v132_v36 = vld [vmem:[%s1454_s0 + $0x59] sm:$0x1]  ;;  %v587_v38 = vld [vmem:[%s1457_s3 + $0x70] sm:$0xff] }
  0x45   :  { %348 = vst [vmem:[#allocation1 + $0x1] ss:$9 sm:$0xff] %v76_v37  ;;  %v588_v37 = vld [vmem:[%s1457_s3 + $0x78] sm:$0xff] }
  0x46   :  { %349 = vst [vmem:[#allocation1 + $0x2] ss:$9 sm:$0xff] %v77_v39  ;;  %593 = vmatpush.msra.mxu1 %v588_v37  ;;  %811 = vmatpush.msra.mxu3 %v588_v37 }
  0x47   :  { %350 = vst [vmem:[#allocation1 + $0x3] ss:$9 sm:$0xff] %v78_v40  ;;  %v133_v40 = vld [vmem:[%s1454_s0 + $0x5a] sm:$0x1] }
  0x48   :  { %351 = vst [vmem:[#allocation1 + $0x4] ss:$9 sm:$0xff] %v79_v41  ;;  %v134_v41 = vld [vmem:[%s1454_s0 + $0x5b] sm:$0x1]  ;;  %594 = vmatpush.msra.mxu1 %v587_v38  ;;  %812 = vmatpush.msra.mxu3 %v587_v38  ;;  %v168_v38 = vld [vmem:[%s1454_s0 + $0x7d] sm:$0x1] }
  0x49   :  { %352 = vst [vmem:[#allocation1 + $0x5] ss:$9 sm:$0xff] %v80_v42  ;;  %v586_v42 = vld [vmem:[%s1457_s3 + $0x68] sm:$0xff] }
  0x4a   :  { %353 = vst [vmem:[#allocation1 + $0x6] ss:$9 sm:$0xff] %v81_v43  ;;  %v135_v43 = vld [vmem:[%s1454_s0 + $0x5c] sm:$0x1]  ;;  %595 = vmatpush.msra.mxu1 %v586_v42  ;;  %813 = vmatpush.msra.mxu3 %v586_v42 }
  0x4b   :  { %354 = vst [vmem:[#allocation1 + $0x7] ss:$9 sm:$0xff] %v82_v44  ;;  %v136_v44 = vld [vmem:[%s1454_s0 + $0x5d] sm:$0x1] }
  0x52   :  { %v355_v47 = vld [vmem:[#allocation1] sm:$0xff] }
  0x53   :  { %799 = vmatmul.msk.f32.gmra.mxu0 %vm455_vm1, %v355_v47  ;;  %356 = vst [vmem:[#allocation1] ss:$9 sm:$0xff] %v83_v45  ;;  %v137_v45 = vld [vmem:[%s1454_s0 + $0x5e] sm:$0x1]  ;;  %v139_v47 = vld [vmem:[%s1454_s0 + $0x60] sm:$0x1] }
  0x54   :  { %357 = vst [vmem:[#allocation1 + $0x1] ss:$9 sm:$0xff] %v84_v46  ;;  %v138_v46 = vld [vmem:[%s1454_s0 + $0x5f] sm:$0x1] }
  0x55   :  { %358 = vst [vmem:[#allocation1 + $0x2] ss:$9 sm:$0xff] %v85_v48  ;;  %v140_v48 = vld [vmem:[%s1454_s0 + $0x61] sm:$0x1] }
  0x56   :  { %359 = vst [vmem:[#allocation1 + $0x3] ss:$9 sm:$0xff] %v86_v49  ;;  %v585_v49 = vld [vmem:[%s1457_s3 + $0x60] sm:$0xff] }
  0x57   :  { %360 = vst [vmem:[#allocation1 + $0x4] ss:$9 sm:$0xff] %v87_v50  ;;  %v584_v50 = vld [vmem:[%s1457_s3 + $0x58] sm:$0xff]  ;;  %596 = vmatpush.msra.mxu1 %v585_v49  ;;  %814 = vmatpush.msra.mxu3 %v585_v49 }
  0x58   :  { %361 = vst [vmem:[#allocation1 + $0x5] ss:$9 sm:$0xff] %v88_v51 }
  0x59   :  { %362 = vst [vmem:[#allocation1 + $0x6] ss:$9 sm:$0xff] %v89_v52  ;;  %v141_v52 = vld [vmem:[%s1454_s0 + $0x62] sm:$0x1]  ;;  %597 = vmatpush.msra.mxu1 %v584_v50  ;;  %815 = vmatpush.msra.mxu3 %v584_v50 }
  0x5a   :  { %363 = vst [vmem:[#allocation1 + $0x7] ss:$9 sm:$0xff] %v90_v53  ;;  %v142_v53 = vld [vmem:[%s1454_s0 + $0x63] sm:$0x1] }
  0x61   :  { %v364_v56 = vld [vmem:[#allocation1] sm:$0xff] }
  0x62   :  { %800 = vmatmul.msk.f32.gmra.mxu0 %vm455_vm1, %v364_v56  ;;  %365 = vst [vmem:[#allocation1] ss:$9 sm:$0xff] %v91_v54  ;;  %v583_v54 = vld [vmem:[%s1457_s3 + $0x50] sm:$0xff]  ;;  %v144_v56 = vld [vmem:[%s1454_s0 + $0x65] sm:$0x1] }
  0x63   :  { %366 = vst [vmem:[#allocation1 + $0x1] ss:$9 sm:$0xff] %v92_v55  ;;  %v143_v55 = vld [vmem:[%s1454_s0 + $0x64] sm:$0x1]  ;;  %598 = vmatpush.msra.mxu1 %v583_v54  ;;  %816 = vmatpush.msra.mxu3 %v583_v54 }
  0x64   :  { %367 = vst [vmem:[#allocation1 + $0x2] ss:$9 sm:$0xff] %v93_v57  ;;  %v582_v57 = vld [vmem:[%s1457_s3 + $0x48] sm:$0xff] }
  0x65   :  { %368 = vst [vmem:[#allocation1 + $0x3] ss:$9 sm:$0xff] %v94_v58  ;;  %v145_v58 = vld [vmem:[%s1454_s0 + $0x66] sm:$0x1]  ;;  %599 = vmatpush.msra.mxu1 %v582_v57  ;;  %817 = vmatpush.msra.mxu3 %v582_v57 }
  0x66   :  { %369 = vst [vmem:[#allocation1 + $0x4] ss:$9 sm:$0xff] %v95_v59  ;;  %v146_v59 = vld [vmem:[%s1454_s0 + $0x67] sm:$0x1] }
  0x67   :  { %370 = vst [vmem:[#allocation1 + $0x5] ss:$9 sm:$0xff] %v96_v60  ;;  %v147_v60 = vld [vmem:[%s1454_s0 + $0x68] sm:$0x1] }
  0x68   :  { %371 = vst [vmem:[#allocation1 + $0x6] ss:$9 sm:$0xff] %v97_v61  ;;  %v148_v61 = vld [vmem:[%s1454_s0 + $0x69] sm:$0x1] }
  0x69   :  { %372 = vst [vmem:[#allocation1 + $0x7] ss:$9 sm:$0xff] %v98_v62  ;;  %v581_v62 = vld [vmem:[%s1457_s3 + $0x40] sm:$0xff] }
  0x6a   :  { %600 = vmatpush.msra.mxu1 %v581_v62  ;;  %818 = vmatpush.msra.mxu3 %v581_v62 }
  0x70   :  { %v373_v1 = vld [vmem:[#allocation1] sm:$0xff] }
  0x71   :  { %801 = vmatmul.msk.f32.gmra.mxu0 %vm455_vm1, %v373_v1  ;;  %374 = vst [vmem:[#allocation1] ss:$9 sm:$0xff] %v99_v63  ;;  %v580_v63 = vld [vmem:[%s1457_s3 + $0x38] sm:$0xff]  ;;  %v149_v1 = vld [vmem:[%s1454_s0 + $0x6a] sm:$0x1] }
  0x72   :  { %375 = vst [vmem:[#allocation1 + $0x1] ss:$9 sm:$0xff] %v100_v0  ;;  %601 = vmatpush.msra.mxu1 %v580_v63  ;;  %819 = vmatpush.msra.mxu3 %v580_v63 }
  0x73   :  { %376 = vst [vmem:[#allocation1 + $0x2] ss:$9 sm:$0xff] %v101_v2  ;;  %v150_v2 = vld [vmem:[%s1454_s0 + $0x6b] sm:$0x1] }
  0x74   :  { %377 = vst [vmem:[#allocation1 + $0x3] ss:$9 sm:$0xff] %v102_v3  ;;  %v579_v3 = vld [vmem:[%s1457_s3 + $0x30] sm:$0xff] }
  0x75   :  { %378 = vst [vmem:[#allocation1 + $0x4] ss:$9 sm:$0xff] %v103_v4  ;;  %v151_v4 = vld [vmem:[%s1454_s0 + $0x6c] sm:$0x1]  ;;  %602 = vmatpush.msra.mxu1 %v579_v3  ;;  %820 = vmatpush.msra.mxu3 %v579_v3 }
  0x76   :  { %379 = vst [vmem:[#allocation1 + $0x5] ss:$9 sm:$0xff] %v104_v5  ;;  %v152_v5 = vld [vmem:[%s1454_s0 + $0x6d] sm:$0x1] }
  0x77   :  { %380 = vst [vmem:[#allocation1 + $0x6] ss:$9 sm:$0xff] %v105_v6  ;;  %v578_v6 = vld [vmem:[%s1457_s3 + $0x28] sm:$0xff] }
  0x78   :  { %381 = vst [vmem:[#allocation1 + $0x7] ss:$9 sm:$0xff] %v106_v7  ;;  %v153_v7 = vld [vmem:[%s1454_s0 + $0x6e] sm:$0x1]  ;;  %603 = vmatpush.msra.mxu1 %v578_v6  ;;  %821 = vmatpush.msra.mxu3 %v578_v6  ;;  %v688_v6 = vld [vmem:[#allocation2 + $0x70] sm:$0xff] }
  0x7f   :  { %v382_v10 = vld [vmem:[#allocation1] sm:$0xff] }
  0x80   :  { %802 = vmatmul.msk.f32.gmra.mxu0 %vm455_vm1, %v382_v10  ;;  %383 = vst [vmem:[#allocation1] ss:$9 sm:$0xff] %v107_v8  ;;  %v154_v8 = vld [vmem:[%s1454_s0 + $0x6f] sm:$0x1]  ;;  %v156_v10 = vld [vmem:[%s1454_s0 + $0x71] sm:$0x1] }
  0x81   :  { %384 = vst [vmem:[#allocation1 + $0x1] ss:$9 sm:$0xff] %v108_v9  ;;  %v155_v9 = vld [vmem:[%s1454_s0 + $0x70] sm:$0x1] }
  0x82   :  { %385 = vst [vmem:[#allocation1 + $0x2] ss:$9 sm:$0xff] %v109_v11  ;;  %v577_v11 = vld [vmem:[%s1457_s3 + $0x20] sm:$0xff] }
  0x83   :  { %386 = vst [vmem:[#allocation1 + $0x3] ss:$9 sm:$0xff] %v110_v12  ;;  %v576_v12 = vld [vmem:[%s1457_s3 + $0x18] sm:$0xff]  ;;  %604 = vmatpush.msra.mxu1 %v577_v11  ;;  %822 = vmatpush.msra.mxu3 %v577_v11 }
  0x84   :  { %387 = vst [vmem:[#allocation1 + $0x4] ss:$9 sm:$0xff] %v111_v13  ;;  %v1352_v13 = vld [vmem:[%s1456_s2] ss:$0 sm:$0xff] }
  0x85   :  { %388 = vst [vmem:[#allocation1 + $0x5] ss:$9 sm:$0xff] %v112_v14  ;;  %605 = vmatpush.msra.mxu1 %v576_v12  ;;  %823 = vmatpush.msra.mxu3 %v576_v12  ;;  %v685_v12 = vld [vmem:[#allocation2 + $0x58] sm:$0xff] }
  0x86   :  { %389 = vst [vmem:[#allocation1 + $0x6] ss:$9 sm:$0xff] %v113_v15 }
  0x87   :  { %390 = vst [vmem:[#allocation1 + $0x7] ss:$9 sm:$0xff] %v114_v16  ;;  %v157_v16 = vld [vmem:[%s1454_s0 + $0x72] sm:$0x1] }
  0x8e   :  { %v391_v19 = vld [vmem:[#allocation1] sm:$0xff] }
  0x8f   :  { %803 = vmatmul.msk.f32.gmra.mxu0 %vm455_vm1, %v391_v19  ;;  %392 = vst [vmem:[#allocation1] ss:$9 sm:$0xff] %v115_v17  ;;  %v158_v17 = vld [vmem:[%s1454_s0 + $0x73] sm:$0x1] }
  0x90   :  { %393 = vst [vmem:[#allocation1 + $0x1] ss:$9 sm:$0xff] %v116_v18  ;;  %v575_v19 = vld [vmem:[%s1457_s3 + $0x10] sm:$0xff] }
  0x91   :  { %394 = vst [vmem:[#allocation1 + $0x2] ss:$9 sm:$0xff] %v117_v20  ;;  %v159_v20 = vld [vmem:[%s1454_s0 + $0x74] sm:$0x1]  ;;  %606 = vmatpush.msra.mxu1 %v575_v19  ;;  %824 = vmatpush.msra.mxu3 %v575_v19  ;;  %v680_v19 = vld [vmem:[#allocation2 + $0x30] sm:$0xff] }
  0x92   :  { %395 = vst [vmem:[#allocation1 + $0x3] ss:$9 sm:$0xff] %v118_v21  ;;  %v160_v21 = vld [vmem:[%s1454_s0 + $0x75] sm:$0x1] }
  0x93   :  { %396 = vst [vmem:[#allocation1 + $0x4] ss:$9 sm:$0xff] %v119_v22  ;;  %v574_v22 = vld [vmem:[%s1457_s3 + $0x8] sm:$0xff] }
  0x94   :  { %397 = vst [vmem:[#allocation1 + $0x5] ss:$9 sm:$0xff] %v120_v23  ;;  %v509_v14 = vpop.f32.mrf.mxu0  ;;  %v161_v23 = vld [vmem:[%s1454_s0 + $0x76] sm:$0x1]  ;;  %607 = vmatpush.msra.mxu1 %v574_v22  ;;  %825 = vmatpush.msra.mxu3 %v574_v22 }
  0x95   :  { %398 = vst [vmem:[#allocation1 + $0x6] ss:$9 sm:$0xff] %v121_v24  ;;  %v510_v18 = vadd.f32 %v1352_v13, %v509_v14  ;;  %v162_v24 = vld [vmem:[%s1454_s0 + $0x77] sm:$0x1]  ;;  %v684_v14 = vld [vmem:[#allocation2 + $0x50] sm:$0xff] }
  0x96   :  { %399 = vst [vmem:[#allocation1 + $0x7] ss:$9 sm:$0xff] %v122_v25  ;;  %v679_v22 = vld [vmem:[#allocation2 + $0x28] sm:$0xff] }
  0x97   :  { %v557_v25 = vmax.f32 %v510_v18, 0.0  ;;  %v681_v18 = vld [vmem:[#allocation2 + $0x38] sm:$0xff] }
  0x9d   :  { %v400_v28 = vld [vmem:[#allocation1] sm:$0xff] }
  0x9e   :  { %804 = vmatmul.msk.f32.gmra.mxu0 %vm455_vm1, %v400_v28  ;;  %401 = vst [vmem:[#allocation1] ss:$9 sm:$0xff] %v123_v26  ;;  %v573_v26 = vld [vmem:[%s1457_s3] sm:$0xff] }
  0x9f   :  { %402 = vst [vmem:[#allocation1 + $0x1] ss:$9 sm:$0xff] %v124_v27  ;;  %608 = vmatpush.msra.mxu1 %v573_v26  ;;  %826 = vmatpush.msra.mxu3 %v573_v26  ;;  %v1425_v26 = vld [vmem:[%s1458_s4] ss:$0 sm:$0xff] }
  0xa0   :  { %403 = vst [vmem:[#allocation1 + $0x2] ss:$9 sm:$0xff] %v125_v29  ;;  %609 = vmatmul.f32.vlgmr.msra.gmra.mxu1 %v557_v25  ;;  %v163_v29 = vld [vmem:[%s1454_s0 + $0x78] sm:$0x1]  ;;  %v677_v25 = vld [vmem:[#allocation2 + $0x18] sm:$0xff] }
  0xa1   :  { %404 = vst [vmem:[#allocation1 + $0x3] ss:$9 sm:$0xff] %v126_v30 }
  0xa2   :  { %405 = vst [vmem:[#allocation1 + $0x4] ss:$9 sm:$0xff] %v127_v31  ;;  %v164_v31 = vld [vmem:[%s1454_s0 + $0x79] sm:$0x1] }
  0xa3   :  { %406 = vst [vmem:[#allocation1 + $0x5] ss:$9 sm:$0xff] %v128_v32  ;;  %v512_v27 = vpop.f32.mrf.mxu0 }
  0xa4   :  { %407 = vst [vmem:[#allocation1 + $0x6] ss:$9 sm:$0xff] %v129_v33  ;;  %v513_v28 = vadd.f32 %v1352_v13, %v512_v27  ;;  %v165_v33 = vld [vmem:[%s1454_s0 + $0x7a] sm:$0x1] }
  0xa5   :  { %408 = vst [vmem:[#allocation1 + $0x7] ss:$9 sm:$0xff] %v130_v34  ;;  %v676_v27 = vld [vmem:[#allocation2 + $0x10] sm:$0xff] }
  0xa6   :  { %v558_v30 = vmax.f32 %v513_v28, 0.0  ;;  %v675_v28 = vld [vmem:[#allocation2 + $0x8] sm:$0xff] }
  0xa8   :  { %612 = vmatmul.f32.gmra.mxu1 %v558_v30 }
  0xac   :  { %v409_v39 = vld [vmem:[#allocation1] sm:$0xff] }
  0xad   :  { %805 = vmatmul.msk.f32.gmra.mxu0 %vm455_vm1, %v409_v39  ;;  %410 = vst [vmem:[#allocation1] ss:$9 sm:$0xff] %v131_v35  ;;  %v166_v35 = vld [vmem:[%s1454_s0 + $0x7b] sm:$0x1]  ;;  %v169_v39 = vld [vmem:[%s1454_s0 + $0x7e] sm:$0x1] }
  0xae   :  { %411 = vst [vmem:[#allocation1 + $0x1] ss:$9 sm:$0xff] %v132_v36  ;;  %v167_v36 = vld [vmem:[%s1454_s0 + $0x7c] sm:$0x1] }
  0xaf   :  { %412 = vst [vmem:[#allocation1 + $0x2] ss:$9 sm:$0xff] %v133_v40  ;;  %v170_v40 = vld [vmem:[%s1454_s0 + $0x7f] sm:$0x1] }
  0xb0   :  { %413 = vst [vmem:[#allocation1 + $0x3] ss:$9 sm:$0xff] %v134_v41 }
  0xb1   :  { %414 = vst [vmem:[#allocation1 + $0x4] ss:$9 sm:$0xff] %v135_v43 }
  0xb2   :  { %415 = vst [vmem:[#allocation1 + $0x5] ss:$9 sm:$0xff] %v136_v44  ;;  %v515_v34 = vpop.f32.mrf.mxu0 }
  0xb3   :  { %416 = vst [vmem:[#allocation1 + $0x6] ss:$9 sm:$0xff] %v137_v45  ;;  %v516_v37 = vadd.f32 %v1352_v13, %v515_v34 }
  0xb4   :  { %417 = vst [vmem:[#allocation1 + $0x7] ss:$9 sm:$0xff] %v138_v46 }
  0xb5   :  { %v559_v41 = vmax.f32 %v516_v37, 0.0 }
  0xb7   :  { %615 = vmatmul.f32.gmra.mxu1 %v559_v41 }
  0xbb   :  { %v418_v51 = vld [vmem:[#allocation1] sm:$0xff] }
  0xbc   :  { %806 = vmatmul.msk.f32.gmra.mxu0 %vm455_vm1, %v418_v51  ;;  %419 = vst [vmem:[#allocation1] ss:$9 sm:$0xff] %v139_v47 }
  0xbd   :  { %420 = vst [vmem:[#allocation1 + $0x1] ss:$9 sm:$0xff] %v140_v48 }
  0xbe   :  { %421 = vst [vmem:[#allocation1 + $0x2] ss:$9 sm:$0xff] %v141_v52 }
  0xbf   :  { %422 = vst [vmem:[#allocation1 + $0x3] ss:$9 sm:$0xff] %v142_v53 }
  0xc0   :  { %423 = vst [vmem:[#allocation1 + $0x4] ss:$9 sm:$0xff] %v143_v55 }
  0xc1   :  { %424 = vst [vmem:[#allocation1 + $0x5] ss:$9 sm:$0xff] %v144_v56  ;;  %v518_v42 = vpop.f32.mrf.mxu0 }
  0xc2   :  { %425 = vst [vmem:[#allocation1 + $0x6] ss:$9 sm:$0xff] %v145_v58  ;;  %v519_v43 = vadd.f32 %v1352_v13, %v518_v42 }
  0xc3   :  { %426 = vst [vmem:[#allocation1 + $0x7] ss:$9 sm:$0xff] %v146_v59 }
  0xc4   :  { %v560_v44 = vmax.f32 %v519_v43, 0.0 }
  0xc6   :  { %618 = vmatmul.f32.gmra.mxu1 %v560_v44 }
  0xca   :  { %v427_v0 = vld [vmem:[#allocation1] sm:$0xff] }
  0xcb   :  { %807 = vmatmul.msk.f32.gmra.mxu0 %vm455_vm1, %v427_v0  ;;  %428 = vst [vmem:[#allocation1] ss:$9 sm:$0xff] %v147_v60 }
  0xcc   :  { %429 = vst [vmem:[#allocation1 + $0x1] ss:$9 sm:$0xff] %v148_v61 }
  0xcd   :  { %430 = vst [vmem:[#allocation1 + $0x2] ss:$9 sm:$0xff] %v149_v1 }
  0xce   :  { %431 = vst [vmem:[#allocation1 + $0x3] ss:$9 sm:$0xff] %v150_v2 }
  0xcf   :  { %432 = vst [vmem:[#allocation1 + $0x4] ss:$9 sm:$0xff] %v151_v4 }
  0xd0   :  { %433 = vst [vmem:[#allocation1 + $0x5] ss:$9 sm:$0xff] %v152_v5  ;;  %v521_v46 = vpop.f32.mrf.mxu0  ;;  %v689_v5 = vld [vmem:[#allocation2 + $0x78] sm:$0xff] }
  0xd1   :  { %434 = vst [vmem:[#allocation1 + $0x6] ss:$9 sm:$0xff] %v153_v7  ;;  %v522_v47 = vadd.f32 %v1352_v13, %v521_v46  ;;  %694 = vmatpush.msra.mxu2 %v689_v5  ;;  %827 = vmatpush.msrb.mxu3 %v689_v5 }
  0xd2   :  { %435 = vst [vmem:[#allocation1 + $0x7] ss:$9 sm:$0xff] %v154_v8  ;;  %v687_v8 = vld [vmem:[#allocation2 + $0x68] sm:$0xff] }
  0xd3   :  { %v561_v48 = vmax.f32 %v522_v47, 0.0  ;;  %695 = vmatpush.msra.mxu2 %v688_v6  ;;  %828 = vmatpush.msrb.mxu3 %v688_v6 }
  0xd5   :  { %621 = vmatmul.f32.gmra.mxu1 %v561_v48  ;;  %696 = vmatpush.msra.mxu2 %v687_v8 }
  0xd6   :  { %829 = vmatpush.msrb.mxu3 %v687_v8 }
  0xd9   :  { %v436_v15 = vld [vmem:[#allocation1] sm:$0xff] }
  0xda   :  { %808 = vmatmul.msk.f32.gmra.mxu0 %vm455_vm1, %v436_v15  ;;  %437 = vst [vmem:[#allocation1] ss:$9 sm:$0xff] %v155_v9  ;;  %v686_v9 = vld [vmem:[#allocation2 + $0x60] sm:$0xff] }
  0xdb   :  { %438 = vst [vmem:[#allocation1 + $0x1] ss:$9 sm:$0xff] %v156_v10  ;;  %697 = vmatpush.msra.mxu2 %v686_v9  ;;  %830 = vmatpush.msrb.mxu3 %v686_v9 }
  0xdc   :  { %439 = vst [vmem:[#allocation1 + $0x2] ss:$9 sm:$0xff] %v157_v16  ;;  %v683_v16 = vld [vmem:[#allocation2 + $0x48] sm:$0xff] }
  0xdd   :  { %440 = vst [vmem:[#allocation1 + $0x3] ss:$9 sm:$0xff] %v158_v17  ;;  %698 = vmatpush.msra.mxu2 %v685_v12  ;;  %831 = vmatpush.msrb.mxu3 %v685_v12  ;;  %v682_v17 = vld [vmem:[#allocation2 + $0x40] sm:$0xff] }
  0xde   :  { %441 = vst [vmem:[#allocation1 + $0x4] ss:$9 sm:$0xff] %v159_v20 }
  0xdf   :  { %442 = vst [vmem:[#allocation1 + $0x5] ss:$9 sm:$0xff] %v160_v21  ;;  %v524_v49 = vpop.f32.mrf.mxu0  ;;  %699 = vmatpush.msra.mxu2 %v684_v14  ;;  %832 = vmatpush.msrb.mxu3 %v684_v14  ;;  %v849_v14 = vld [vmem:[%s1460_s6] ss:$0 sm:$0xff]  ;;  %s905_s6 = smov [#allocation5]  }
  0xe0   :  { %443 = vst [vmem:[#allocation1 + $0x6] ss:$9 sm:$0xff] %v161_v23  ;;  %v525_v50 = vadd.f32 %v1352_v13, %v524_v49  ;;  %s779_s21 = sshll.u32 %s905_s6, 4  ;;  %s780_s21 = int_to_ptr.vmem [resolvable:$true] %s779_s21 }
  0xe1   :  { %444 = vst [vmem:[#allocation1 + $0x7] ss:$9 sm:$0xff] %v162_v24  ;;  %700 = vmatpush.msra.mxu2 %v683_v16  ;;  %833 = vmatpush.msrb.mxu3 %v683_v16  ;;  %v678_v24 = vld [vmem:[#allocation2 + $0x20] sm:$0xff] }
  0xe2   :  { %v562_v51 = vmax.f32 %v525_v50, 0.0 }
  0xe3   :  { %701 = vmatpush.msra.mxu2 %v682_v17  ;;  %834 = vmatpush.msrb.mxu3 %v682_v17 }
  0xe4   :  { %624 = vmatmul.f32.gmra.mxu1 %v562_v51 }
  0xe5   :  { %702 = vmatpush.msra.mxu2 %v681_v18  ;;  %835 = vmatpush.msrb.mxu3 %v681_v18 }
  0xe7   :  { %703 = vmatpush.msra.mxu2 %v680_v19  ;;  %836 = vmatpush.msrb.mxu3 %v680_v19 }
  0xe8   :  { %v445_v32 = vld [vmem:[#allocation1] sm:$0xff] }
  0xe9   :  { %809 = vmatmul.msk.f32.gmra.mxu0 %vm455_vm1, %v445_v32  ;;  %446 = vst [vmem:[#allocation1] ss:$9 sm:$0xff] %v163_v29  ;;  %704 = vmatpush.msra.mxu2 %v679_v22 }
  0xea   :  { %447 = vst [vmem:[#allocation1 + $0x1] ss:$9 sm:$0xff] %v164_v31  ;;  %837 = vmatpush.msrb.mxu3 %v679_v22  ;;  %v674_v31 = vld [vmem:[#allocation2] sm:$0xff] }
  0xeb   :  { %448 = vst [vmem:[#allocation1 + $0x2] ss:$9 sm:$0xff] %v165_v33  ;;  %705 = vmatpush.msra.mxu2 %v678_v24 }
  0xec   :  { %449 = vst [vmem:[#allocation1 + $0x3] ss:$9 sm:$0xff] %v166_v35  ;;  %838 = vmatpush.msrb.mxu3 %v678_v24 }
  0xed   :  { %450 = vst [vmem:[#allocation1 + $0x4] ss:$9 sm:$0xff] %v167_v36  ;;  %706 = vmatpush.msra.mxu2 %v677_v25 }
  0xee   :  { %451 = vst [vmem:[#allocation1 + $0x5] ss:$9 sm:$0xff] %v168_v38  ;;  %v527_v52 = vpop.f32.mrf.mxu0  ;;  %839 = vmatpush.msrb.mxu3 %v677_v25 }
  0xef   :  { %452 = vst [vmem:[#allocation1 + $0x6] ss:$9 sm:$0xff] %v169_v39  ;;  %v528_v53 = vadd.f32 %v1352_v13, %v527_v52  ;;  %707 = vmatpush.msra.mxu2 %v676_v27 }
  0xf0   :  { %453 = vst [vmem:[#allocation1 + $0x7] ss:$9 sm:$0xff] %v170_v40  ;;  %840 = vmatpush.msrb.mxu3 %v676_v27 }
  0xf1   :  { %v563_v54 = vmax.f32 %v528_v53, 0.0  ;;  %708 = vmatpush.msra.mxu2 %v675_v28 }
  0xf2   :  { %841 = vmatpush.msrb.mxu3 %v675_v28 }
  0xf3   :  { %627 = vmatmul.f32.gmra.mxu1 %v563_v54  ;;  %709 = vmatpush.msra.mxu2 %v674_v31 }
  0xf4   :  { %842 = vmatpush.msrb.mxu3 %v674_v31 }
  0xf7   :  { %v454_v45 = vld [vmem:[#allocation1] sm:$0xff] }
  0xf8   :  { %810 = vmatmul.msk.f32.gmra.mxu0 %vm455_vm1, %v454_v45 }
  0xfd   :  { %v530_v55 = vpop.f32.mrf.mxu0 }
  0xfe   :  { %v531_v56 = vadd.f32 %v1352_v13, %v530_v55 }
 0x100   :  { %v564_v57 = vmax.f32 %v531_v56, 0.0 }
 0x102   :  { %630 = vmatmul.f32.gmra.mxu1 %v564_v57 }
 0x10c   :  { %v533_v58 = vpop.f32.mrf.mxu0 }
 0x10d   :  { %v534_v59 = vadd.f32 %v1352_v13, %v533_v58 }
 0x10f   :  { %v565_v60 = vmax.f32 %v534_v59, 0.0 }
 0x111   :  { %633 = vmatmul.f32.gmra.mxu1 %v565_v60 }
 0x11b   :  { %v536_v61 = vpop.f32.mrf.mxu0 }
 0x11c   :  { %v537_v62 = vadd.f32 %v1352_v13, %v536_v61 }
 0x11d   :  { %v610_v29 = vpop.f32.mrf.mxu1 }
 0x11e   :  { %v566_v63 = vmax.f32 %v537_v62, 0.0  ;;  %v611_v30 = vadd.f32 %v1425_v26, %v610_v29 }
 0x120   :  { %636 = vmatmul.f32.gmra.mxu1 %v566_v63  ;;  %v658_v32 = vmax.f32 %v611_v30, 0.0 }
 0x122   :  { %710 = vmatmul.f32.vlgmr.msra.gmra.mxu2 %v658_v32 }
 0x125   :  { %v613_v35 = vpop.f32.mrf.mxu1 }
 0x126   :  { %v614_v36 = vadd.f32 %v1425_v26, %v613_v35 }
 0x128   :  { %v659_v38 = vmax.f32 %v614_v36, 0.0 }
 0x12a   :  { %v539_v0 = vpop.f32.mrf.mxu0  ;;  %713 = vmatmul.f32.gmra.mxu2 %v659_v38 }
 0x12b   :  { %v540_v1 = vadd.f32 %v1352_v13, %v539_v0 }
 0x12d   :  { %v567_v2 = vmax.f32 %v540_v1, 0.0 }
 0x12f   :  { %639 = vmatmul.f32.gmra.mxu1 %v567_v2 }
 0x134   :  { %v616_v39 = vpop.f32.mrf.mxu1 }
 0x135   :  { %v617_v40 = vadd.f32 %v1425_v26, %v616_v39 }
 0x137   :  { %v660_v41 = vmax.f32 %v617_v40, 0.0 }
 0x139   :  { %v542_v3 = vpop.f32.mrf.mxu0  ;;  %716 = vmatmul.f32.gmra.mxu2 %v660_v41 }
 0x13a   :  { %v543_v4 = vadd.f32 %v1352_v13, %v542_v3 }
 0x13c   :  { %v568_v7 = vmax.f32 %v543_v4, 0.0 }
 0x13e   :  { %642 = vmatmul.f32.vlgmr.msra.gmra.mxu3 %v568_v7 }
 0x143   :  { %v619_v44 = vpop.f32.mrf.mxu1 }
 0x144   :  { %v620_v46 = vadd.f32 %v1425_v26, %v619_v44 }
 0x146   :  { %v661_v47 = vmax.f32 %v620_v46, 0.0 }
 0x148   :  { %v545_v10 = vpop.f32.mrf.mxu0  ;;  %719 = vmatmul.f32.gmra.mxu2 %v661_v47 }
 0x149   :  { %v546_v11 = vadd.f32 %v1352_v13, %v545_v10 }
 0x14b   :  { %v569_v15 = vmax.f32 %v546_v11, 0.0 }
 0x14d   :  { %645 = vmatmul.f32.gmra.mxu3 %v569_v15 }
 0x152   :  { %v622_v48 = vpop.f32.mrf.mxu1 }
 0x153   :  { %v623_v49 = vadd.f32 %v1425_v26, %v622_v48 }
 0x155   :  { %v662_v50 = vmax.f32 %v623_v49, 0.0 }
 0x157   :  { %v548_v20 = vpop.f32.mrf.mxu0  ;;  %722 = vmatmul.f32.gmra.mxu2 %v662_v50 }
 0x158   :  { %v549_v21 = vadd.f32 %v1352_v13, %v548_v20 }
 0x15a   :  { %v570_v23 = vmax.f32 %v549_v21, 0.0 }
 0x15c   :  { %648 = vmatmul.f32.gmra.mxu3 %v570_v23 }
 0x161   :  { %v625_v51 = vpop.f32.mrf.mxu1 }
 0x162   :  { %v626_v52 = vadd.f32 %v1425_v26, %v625_v51 }
 0x164   :  { %v663_v53 = vmax.f32 %v626_v52, 0.0 }
 0x166   :  { %v551_v33 = vpop.f32.mrf.mxu0  ;;  %725 = vmatmul.f32.gmra.mxu2 %v663_v53 }
 0x167   :  { %v552_v34 = vadd.f32 %v1352_v13, %v551_v33 }
 0x169   :  { %v571_v37 = vmax.f32 %v552_v34, 0.0 }
 0x16b   :  { %651 = vmatmul.f32.gmra.mxu3 %v571_v37 }
 0x170   :  { %v628_v54 = vpop.f32.mrf.mxu1 }
 0x175   :  { %v554_v42 = vpop.f32.mrf.mxu0 }
 0x176   :  { %v555_v43 = vadd.f32 %v1352_v13, %v554_v42  ;;  %v629_v13 = vadd.f32 %v1425_v26, %v628_v54 }
 0x178   :  { %v572_v45 = vmax.f32 %v555_v43, 0.0  ;;  %v664_v55 = vmax.f32 %v629_v13, 0.0 }
 0x17a   :  { %654 = vmatmul.f32.gmra.mxu3 %v572_v45  ;;  %728 = vmatmul.f32.gmra.mxu2 %v664_v55 }
 0x17f   :  { %v631_v56 = vpop.f32.mrf.mxu1 }
 0x180   :  { %v632_v57 = vadd.f32 %v1425_v26, %v631_v56 }
 0x182   :  { %v665_v58 = vmax.f32 %v632_v57, 0.0 }
 0x184   :  { %731 = vmatmul.f32.gmra.mxu2 %v665_v58 }
 0x18e   :  { %v634_v59 = vpop.f32.mrf.mxu1 }
 0x18f   :  { %v635_v60 = vadd.f32 %v1425_v26, %v634_v59 }
 0x191   :  { %v666_v61 = vmax.f32 %v635_v60, 0.0 }
 0x193   :  { %734 = vmatmul.f32.gmra.mxu2 %v666_v61 }
 0x19d   :  { %v637_v62 = vpop.f32.mrf.mxu1 }
 0x19e   :  { %v638_v63 = vadd.f32 %v1425_v26, %v637_v62 }
 0x1a0   :  { %v667_v0 = vmax.f32 %v638_v63, 0.0 }
 0x1a2   :  { %737 = vmatmul.f32.gmra.mxu2 %v667_v0 }
 0x1a5   :  { %v711_v15 = vpop.f32.mrf.mxu2 }
 0x1a6   :  { %v712_v16 = vadd.f32 %v849_v14, %v711_v15 }
 0x1a8   :  { %759 = vst [vmem:[#allocation5] sm:$0xff] %v712_v16 }
 0x1ac   :  { %v640_v1 = vpop.f32.mrf.mxu1 }
 0x1ad   :  { %v641_v2 = vadd.f32 %v1425_v26, %v640_v1  ;;  %v714_v19 = vpop.f32.mrf.mxu2 }
 0x1ae   :  { %v715_v20 = vadd.f32 %v849_v14, %v714_v19 }
 0x1af   :  { %v668_v3 = vmax.f32 %v641_v2, 0.0 }
 0x1b0   :  { %760 = vst [vmem:[#allocation5 + $0x8] sm:$0xff] %v715_v20 }
 0x1b1   :  { %740 = vmatmul.f32.gmra.mxu2 %v668_v3 }
 0x1bc   :  { %v717_v22 = vpop.f32.mrf.mxu2 }
 0x1bd   :  { %v718_v23 = vadd.f32 %v849_v14, %v717_v22 }
 0x1bf   :  { %761 = vst [vmem:[#allocation5 + $0x10] sm:$0xff] %v718_v23 }
 0x1c1   :  { %v643_v4 = vpop.f32.mrf.mxu3 }
 0x1c2   :  { %v644_v5 = vadd.f32 %v1425_v26, %v643_v4 }
 0x1c4   :  { %v669_v6 = vmax.f32 %v644_v5, 0.0 }
 0x1c6   :  { %743 = vmatmul.f32.vlgmr.msrb.gmra.mxu3 %v669_v6 }
 0x1cb   :  { %v720_v27 = vpop.f32.mrf.mxu2 }
 0x1cc   :  { %v721_v29 = vadd.f32 %v849_v14, %v720_v27 }
 0x1ce   :  { %762 = vst [vmem:[#allocation5 + $0x18] sm:$0xff] %v721_v29 }
 0x1d0   :  { %v646_v7 = vpop.f32.mrf.mxu3 }
 0x1d1   :  { %v647_v8 = vadd.f32 %v1425_v26, %v646_v7 }
 0x1d3   :  { %v670_v9 = vmax.f32 %v647_v8, 0.0 }
 0x1d5   :  { %746 = vmatmul.f32.gmra.mxu3 %v670_v9 }
 0x1da   :  { %v723_v30 = vpop.f32.mrf.mxu2 }
 0x1db   :  { %v724_v31 = vadd.f32 %v849_v14, %v723_v30 }
 0x1dd   :  { %763 = vst [vmem:[#allocation5 + $0x20] sm:$0xff] %v724_v31 }
 0x1df   :  { %v649_v10 = vpop.f32.mrf.mxu3 }
 0x1e0   :  { %v650_v11 = vadd.f32 %v1425_v26, %v649_v10 }
 0x1e2   :  { %v671_v12 = vmax.f32 %v650_v11, 0.0 }
 0x1e4   :  { %749 = vmatmul.f32.gmra.mxu3 %v671_v12 }
 0x1e9   :  { %v726_v32 = vpop.f32.mrf.mxu2 }
 0x1ea   :  { %v727_v33 = vadd.f32 %v849_v14, %v726_v32 }
 0x1ec   :  { %764 = vst [vmem:[#allocation5 + $0x28] sm:$0xff] %v727_v33 }
 0x1ee   :  { %v652_v17 = vpop.f32.mrf.mxu3 }
 0x1ef   :  { %v653_v18 = vadd.f32 %v1425_v26, %v652_v17 }
 0x1f1   :  { %v672_v21 = vmax.f32 %v653_v18, 0.0 }
 0x1f3   :  { %752 = vmatmul.f32.gmra.mxu3 %v672_v21 }
 0x1fd   :  { %v655_v24 = vpop.f32.mrf.mxu3  ;;  %v729_v34 = vpop.f32.mrf.mxu2 }
 0x1fe   :  { %v656_v25 = vadd.f32 %v1425_v26, %v655_v24  ;;  %v730_v35 = vadd.f32 %v849_v14, %v729_v34 }
 0x200   :  { %v673_v28 = vmax.f32 %v656_v25, 0.0  ;;  %765 = vst [vmem:[#allocation5 + $0x30] sm:$0xff] %v730_v35 }
 0x202   :  { %755 = vmatmul.f32.gmra.mxu3 %v673_v28 }
 0x207   :  { %v732_v36 = vpop.f32.mrf.mxu2 }
 0x208   :  { %v733_v37 = vadd.f32 %v849_v14, %v732_v36 }
 0x20a   :  { %766 = vst [vmem:[#allocation5 + $0x38] sm:$0xff] %v733_v37 }
 0x216   :  { %v735_v38 = vpop.f32.mrf.mxu2 }
 0x217   :  { %v736_v39 = vadd.f32 %v849_v14, %v735_v38 }
 0x219   :  { %767 = vst [vmem:[#allocation5 + $0x40] sm:$0xff] %v736_v39 }
 0x225   :  { %v738_v26 = vpop.f32.mrf.mxu2 }
 0x226   :  { %v739_v40 = vadd.f32 %v849_v14, %v738_v26 }
 0x228   :  { %768 = vst [vmem:[#allocation5 + $0x48] sm:$0xff] %v739_v40 }
 0x234   :  { %v741_v41 = vpop.f32.mrf.mxu2 }
 0x235   :  { %v742_v42 = vadd.f32 %v849_v14, %v741_v41 }
 0x237   :  { %769 = vst [vmem:[#allocation5 + $0x50] sm:$0xff] %v742_v42 }
 0x249   :  { %v744_v43 = vpop.f32.mrf.mxu3 }
 0x24a   :  { %v745_v44 = vadd.f32 %v849_v14, %v744_v43 }
 0x24c   :  { %770 = vst [vmem:[#allocation5 + $0x58] sm:$0xff] %v745_v44 }
 0x258   :  { %v747_v45 = vpop.f32.mrf.mxu3 }
 0x259   :  { %v748_v46 = vadd.f32 %v849_v14, %v747_v45 }
 0x25b   :  { %771 = vst [vmem:[#allocation5 + $0x60] sm:$0xff] %v748_v46 }
 0x267   :  { %v750_v47 = vpop.f32.mrf.mxu3 }
 0x268   :  { %v751_v48 = vadd.f32 %v849_v14, %v750_v47 }
 0x26a   :  { %772 = vst [vmem:[#allocation5 + $0x68] sm:$0xff] %v751_v48 }
 0x276   :  { %v753_v49 = vpop.f32.mrf.mxu3 }
 0x277   :  { %v754_v50 = vadd.f32 %v849_v14, %v753_v49 }
 0x279   :  { %773 = vst [vmem:[#allocation5 + $0x70] sm:$0xff] %v754_v50 }
 0x285   :  { %v756_v51 = vpop.f32.mrf.mxu3 }
 0x286   :  { %v757_v52 = vadd.f32 %v849_v14, %v756_v51 }
 0x288   :  { %774 = vst [vmem:[#allocation5 + $0x78] sm:$0xff] %v757_v52 }
 0x289   :  { %787 = dma.vmem_to_hbm [thread:$0]  %s780_s21, 2048, %s782_s24, [#allocation4], %s903_s29, %s903_s29, %s904_s30  }
 0x28a   :  { %900 = dma.done.wait [#allocation4], 2048  }
 0x28b   :  { %901 = vsyncadd [#allocation4], 4294965248 }
 0x28c   :  { %792 = vsyncpa [#allocation3], 1 }
 0x28d   :  { %793 = vsyncpa [#allocation4], 1 }

</bundles_post_ra>
